<compile_context>
chip_gen: v7x
topology: tpu7x:2x2x1
jax: 0.10.0
libtpu: 0.0.40
codegen_flags: <defaults>
</compile_context>

<pallas_src>
import jax
import jax.numpy as jnp
from jax import lax
from jax.experimental import pallas as pl
from jax.experimental.pallas import tpu as pltpu


def gru_kernel(x_ref, h0_ref, wih_ref, whh_ref, bi_ref, bhn_ref,
               wout_ref, bout_ref, out_ref, xproj_ref, h_all_ref):
    seq_len = x_ref.shape[0]
    H = h0_ref.shape[-1]

    # Hoisted input projection (+ fused r/z biases) for ALL timesteps:
    # (seq_len, input_dim) @ (input_dim, 3H) -> (seq_len, 3H).  Off the
    # serial critical path.
    xproj_ref[...] = (jnp.dot(x_ref[...], wih_ref[...],
                              preferred_element_type=jnp.float32)
                      + bi_ref[...])

    # Load weights once, outside the loop (kept in vregs by the compiler).
    whh = whh_ref[...]          # (H, 3H)
    b_hn = bhn_ref[...]         # (1, H)

    def body(t, h_prev):                         # h_prev: (1, H) in carry
        xp = xproj_ref[pl.ds(t, 1), :]           # (1, 3H) precomputed
        hp = jnp.dot(h_prev, whh,
                     preferred_element_type=jnp.float32)   # (1, 3H)
        r = jax.nn.sigmoid(xp[:, 0:H] + hp[:, 0:H])
        z = jax.nn.sigmoid(xp[:, H:2 * H] + hp[:, H:2 * H])
        n = jnp.tanh(xp[:, 2 * H:] + r * (hp[:, 2 * H:] + b_hn))
        h_new = (1.0 - z) * n + z * h_prev
        h_all_ref[pl.ds(t, 1), :] = h_new        # only for the output head
        return h_new

    # Short static trip count -> fully unroll for cross-step overlap.
    lax.fori_loop(0, seq_len, body, h0_ref[...], unroll=True)

    # Output head once, after the recurrence: one block matmul + one store.
    out_ref[...] = (jnp.dot(h_all_ref[...], wout_ref[...],
                            preferred_element_type=jnp.float32)
                    + bout_ref[...])


def gru_forward(x, h0, w_ih, w_hh, b_ih, b_hh, w_out, b_out):
    """x: (seq_len, input_dim); returns (seq_len, output_dim).

    w_ih: (input_dim, 3*hidden), w_hh: (hidden, 3*hidden), gate order [r,z,n]
    b_ih/b_hh: (1, 3*hidden);  w_out: (hidden, output_dim); b_out: (1, out).
    """
    seq_len = x.shape[0]
    H = h0.shape[-1]
    output_dim = w_out.shape[-1]

    # Pre-fuse the r/z hidden biases into the input-side bias (exact),
    # keep only b_hn for the per-step path (it multiplies with r).
    b_i_fused = b_ih.at[:, :2 * H].add(b_hh[:, :2 * H])
    b_hn = b_hh[:, 2 * H:]

    vmem = pl.BlockSpec(memory_space=pltpu.MemorySpace.VMEM)
    out = pl.pallas_call(
        gru_kernel,
        out_shape=jax.ShapeDtypeStruct((seq_len, output_dim), jnp.float32),
        in_specs=[vmem] * 8,
        out_specs=vmem,
        scratch_shapes=[
            pltpu.VMEM((seq_len, 3 * H), jnp.float32),   # hoisted x-projection
            pltpu.VMEM((seq_len, H), jnp.float32),       # all hidden states
        ],
    )(x, h0, w_ih, w_hh, b_i_fused, b_hn, w_out, b_out)
    return out


def gru_reference(x, h0, w_ih, w_hh, b_ih, b_hh, w_out, b_out):
    """Pure-JAX reference mirroring torch.nn.GRU(1 layer) + Linear, batch=1."""
    H = h0.shape[-1]

    def step(h, x_t):
        xp = x_t[None, :] @ w_ih + b_ih
        hp = h @ w_hh + b_hh
        r = jax.nn.sigmoid(xp[:, :H] + hp[:, :H])
        z = jax.nn.sigmoid(xp[:, H:2 * H] + hp[:, H:2 * H])
        n = jnp.tanh(xp[:, 2 * H:] + r * hp[:, 2 * H:])
        h_new = (1.0 - z) * n + z * h
        y = h_new @ w_out + b_out
        return h_new, y[0]

    _, ys = lax.scan(step, h0, x)
    return ys


if __name__ == "__main__":
    # small shapes consistent with the module (batch == 1 squeezed out)
    seq_len, input_dim, hidden_dim, output_dim = 8, 16, 32, 8

    key = jax.random.PRNGKey(0)
    ks = jax.random.split(key, 8)

    bound = 1.0 / jnp.sqrt(hidden_dim)
    # GRU gate weights stored transposed: (in_features, 3*hidden), order [r,z,n]
    w_ih = jax.random.uniform(ks[0], (input_dim, 3 * hidden_dim),
                              jnp.float32, -bound, bound)
    w_hh = jax.random.uniform(ks[1], (hidden_dim, 3 * hidden_dim),
                              jnp.float32, -bound, bound)
    b_ih = jax.random.uniform(ks[2], (1, 3 * hidden_dim), jnp.float32, -bound, bound)
    b_hh = jax.random.uniform(ks[3], (1, 3 * hidden_dim), jnp.float32, -bound, bound)
    w_out = jax.random.uniform(ks[4], (hidden_dim, output_dim),
                               jnp.float32, -bound, bound)
    b_out = jax.random.uniform(ks[5], (1, output_dim), jnp.float32, -bound, bound)

    # persistent hidden state: torch.randn(1, 1, hidden_dim) -> squeeze batch
    h0 = jax.random.normal(ks[6], (1, hidden_dim), jnp.float32)

    # input: (seq_len, batch=1, input_dim) -> squeezed to (seq_len, input_dim)
    x = jax.random.normal(ks[7], (seq_len, input_dim), jnp.float32)

    out = gru_forward(x, h0, w_ih, w_hh, b_ih, b_hh, w_out, b_out)
    out = jax.block_until_ready(out)

    ref = gru_reference(x, h0, w_ih, w_hh, b_ih, b_hh, w_out, b_out)
    assert out.shape == (seq_len, output_dim)
    assert jnp.allclose(out, ref, atol=1e-5, rtol=1e-5)

    # Note: output_resized in the PyTorch forward is just output.squeeze(1);
    # the torch.randn init is fully overwritten, so no RNG is needed here.
    print("KERNEL_OK")
</pallas_src>

<mosaic_0001>
module attributes {stable_mosaic.version = 11 : i64} {
  func.func @gru_kernel(%arg0: memref<8x16xf32, #tpu.memory_space<vmem>>, %arg1: memref<1x32xf32, #tpu.memory_space<vmem>>, %arg2: memref<16x96xf32, #tpu.memory_space<vmem>>, %arg3: memref<32x96xf32, #tpu.memory_space<vmem>>, %arg4: memref<1x96xf32, #tpu.memory_space<vmem>>, %arg5: memref<1x32xf32, #tpu.memory_space<vmem>>, %arg6: memref<32x8xf32, #tpu.memory_space<vmem>>, %arg7: memref<1x8xf32, #tpu.memory_space<vmem>>, %arg8: memref<8x8xf32, #tpu.memory_space<vmem>>, %arg9: memref<8x96xf32, #tpu.memory_space<vmem>>, %arg10: memref<8x32xf32, #tpu.memory_space<vmem>>) attributes {dimension_semantics = [], scalar_prefetch = 0 : i64, scratch_operands = 2 : i64, tpu.core_type = #tpu.core_type<tc>} {
    %c0 = arith.constant 0 : index
    %c0_0 = arith.constant 0 : index
    %0 = vector.load %arg0[%c0, %c0_0] : memref<8x16xf32, #tpu.memory_space<vmem>>, vector<8x16xf32>
    %c0_1 = arith.constant 0 : index
    %c0_2 = arith.constant 0 : index
    %1 = vector.load %arg2[%c0_1, %c0_2] : memref<16x96xf32, #tpu.memory_space<vmem>>, vector<16x96xf32>
    %cst = arith.constant dense<0.000000e+00> : vector<8x96xf32>
    %2 = tpu.matmul %0, %1, %cst {dimension_numbers = #tpu.dot_dimension_numbers<[1], [0], [0], [1], [0, 0, 1, 1], [], []>} : vector<8x16xf32>, vector<16x96xf32>, vector<8x96xf32> -> vector<8x96xf32>
    %c0_3 = arith.constant 0 : index
    %c0_4 = arith.constant 0 : index
    %3 = vector.load %arg4[%c0_3, %c0_4] : memref<1x96xf32, #tpu.memory_space<vmem>>, vector<1x96xf32>
    %4 = vector.broadcast %3 : vector<1x96xf32> to vector<8x96xf32>
    %5 = arith.addf %2, %4 : vector<8x96xf32>
    %c0_5 = arith.constant 0 : index
    %c0_6 = arith.constant 0 : index
    %6 = vector.load %arg9[%c0_5, %c0_6] : memref<8x96xf32, #tpu.memory_space<vmem>>, vector<8x96xf32>
    tpu.vector_store %arg9[%c0_5, %c0_6], %5 {strides = array<i32>} : memref<8x96xf32, #tpu.memory_space<vmem>>, vector<8x96xf32>,
    %c0_7 = arith.constant 0 : index
    %c0_8 = arith.constant 0 : index
    %7 = vector.load %arg3[%c0_7, %c0_8] : memref<32x96xf32, #tpu.memory_space<vmem>>, vector<32x96xf32>
    %c0_9 = arith.constant 0 : index
    %c0_10 = arith.constant 0 : index
    %8 = vector.load %arg5[%c0_9, %c0_10] : memref<1x32xf32, #tpu.memory_space<vmem>>, vector<1x32xf32>
    %c0_11 = arith.constant 0 : index
    %c0_12 = arith.constant 0 : index
    %9 = vector.load %arg1[%c0_11, %c0_12] : memref<1x32xf32, #tpu.memory_space<vmem>>, vector<1x32xf32>
    %c0_i32 = arith.constant 0 : i32
    %10 = arith.index_cast %c0_i32 : i32 to index
    %c0_13 = arith.constant 0 : index
    %11 = vector.load %arg9[%10, %c0_13] : memref<8x96xf32, #tpu.memory_space<vmem>>, vector<1x96xf32>
    %cst_14 = arith.constant dense<0.000000e+00> : vector<1x96xf32>
    %12 = tpu.matmul %9, %7, %cst_14 {dimension_numbers = #tpu.dot_dimension_numbers<[1], [0], [0], [1], [0, 0, 1, 1], [], []>} : vector<1x32xf32>, vector<32x96xf32>, vector<1x96xf32> -> vector<1x96xf32>
    %13 = vector.extract_strided_slice %11 {offsets = [0, 0], sizes = [1, 32], strides = [1, 1]} : vector<1x96xf32> to vector<1x32xf32>
    %14 = vector.extract_strided_slice %12 {offsets = [0, 0], sizes = [1, 32], strides = [1, 1]} : vector<1x96xf32> to vector<1x32xf32>
    %15 = arith.addf %13, %14 : vector<1x32xf32>
    %16 = arith.negf %15 : vector<1x32xf32>
    %17 = math.exp %16 : vector<1x32xf32>
    %cst_15 = arith.constant 1.000000e+00 : f32
    %18 = vector.broadcast %cst_15 : f32 to vector<1x32xf32>
    %19 = arith.addf %18, %17 : vector<1x32xf32>
    %20 = arith.divf %18, %19 : vector<1x32xf32>
    %21 = vector.extract_strided_slice %11 {offsets = [0, 32], sizes = [1, 32], strides = [1, 1]} : vector<1x96xf32> to vector<1x32xf32>
    %22 = vector.extract_strided_slice %12 {offsets = [0, 32], sizes = [1, 32], strides = [1, 1]} : vector<1x96xf32> to vector<1x32xf32>
    %23 = arith.addf %21, %22 : vector<1x32xf32>
    %24 = arith.negf %23 : vector<1x32xf32>
    %25 = math.exp %24 : vector<1x32xf32>
    %cst_16 = arith.constant 1.000000e+00 : f32
    %26 = vector.broadcast %cst_16 : f32 to vector<1x32xf32>
    %27 = arith.addf %26, %25 : vector<1x32xf32>
    %28 = arith.divf %26, %27 : vector<1x32xf32>
    %29 = vector.extract_strided_slice %11 {offsets = [0, 64], sizes = [1, 32], strides = [1, 1]} : vector<1x96xf32> to vector<1x32xf32>
    %30 = vector.extract_strided_slice %12 {offsets = [0, 64], sizes = [1, 32], strides = [1, 1]} : vector<1x96xf32> to vector<1x32xf32>
    %31 = arith.addf %30, %8 : vector<1x32xf32>
    %32 = arith.mulf %20, %31 : vector<1x32xf32>
    %33 = arith.addf %29, %32 : vector<1x32xf32>
    %34 = math.tanh %33 : vector<1x32xf32>
    %cst_17 = arith.constant 1.000000e+00 : f32
    %35 = vector.broadcast %cst_17 : f32 to vector<1x32xf32>
    %36 = arith.subf %35, %28 : vector<1x32xf32>
    %37 = arith.mulf %36, %34 : vector<1x32xf32>
    %38 = arith.mulf %28, %9 : vector<1x32xf32>
    %39 = arith.addf %37, %38 : vector<1x32xf32>
    %40 = arith.index_cast %c0_i32 : i32 to index
    %c0_18 = arith.constant 0 : index
    %41 = vector.load %arg10[%40, %c0_18] : memref<8x32xf32, #tpu.memory_space<vmem>>, vector<1x32xf32>
    tpu.vector_store %arg10[%40, %c0_18], %39 {strides = array<i32>} : memref<8x32xf32, #tpu.memory_space<vmem>>, vector<1x32xf32>,
    %c1_i32 = arith.constant 1 : i32
    %42 = arith.index_cast %c1_i32 : i32 to index
    %c0_19 = arith.constant 0 : index
    %43 = vector.load %arg9[%42, %c0_19] : memref<8x96xf32, #tpu.memory_space<vmem>>, vector<1x96xf32>
    %cst_20 = arith.constant dense<0.000000e+00> : vector<1x96xf32>
    %44 = tpu.matmul %39, %7, %cst_20 {dimension_numbers = #tpu.dot_dimension_numbers<[1], [0], [0], [1], [0, 0, 1, 1], [], []>} : vector<1x32xf32>, vector<32x96xf32>, vector<1x96xf32> -> vector<1x96xf32>
    %45 = vector.extract_strided_slice %43 {offsets = [0, 0], sizes = [1, 32], strides = [1, 1]} : vector<1x96xf32> to vector<1x32xf32>
    %46 = vector.extract_strided_slice %44 {offsets = [0, 0], sizes = [1, 32], strides = [1, 1]} : vector<1x96xf32> to vector<1x32xf32>
    %47 = arith.addf %45, %46 : vector<1x32xf32>
    %48 = arith.negf %47 : vector<1x32xf32>
    %49 = math.exp %48 : vector<1x32xf32>
    %cst_21 = arith.constant 1.000000e+00 : f32
    %50 = vector.broadcast %cst_21 : f32 to vector<1x32xf32>
    %51 = arith.addf %50, %49 : vector<1x32xf32>
    %52 = arith.divf %50, %51 : vector<1x32xf32>
    %53 = vector.extract_strided_slice %43 {offsets = [0, 32], sizes = [1, 32], strides = [1, 1]} : vector<1x96xf32> to vector<1x32xf32>
    %54 = vector.extract_strided_slice %44 {offsets = [0, 32], sizes = [1, 32], strides = [1, 1]} : vector<1x96xf32> to vector<1x32xf32>
    %55 = arith.addf %53, %54 : vector<1x32xf32>
    %56 = arith.negf %55 : vector<1x32xf32>
    %57 = math.exp %56 : vector<1x32xf32>
    %cst_22 = arith.constant 1.000000e+00 : f32
    %58 = vector.broadcast %cst_22 : f32 to vector<1x32xf32>
    %59 = arith.addf %58, %57 : vector<1x32xf32>
    %60 = arith.divf %58, %59 : vector<1x32xf32>
    %61 = vector.extract_strided_slice %43 {offsets = [0, 64], sizes = [1, 32], strides = [1, 1]} : vector<1x96xf32> to vector<1x32xf32>
    %62 = vector.extract_strided_slice %44 {offsets = [0, 64], sizes = [1, 32], strides = [1, 1]} : vector<1x96xf32> to vector<1x32xf32>
    %63 = arith.addf %62, %8 : vector<1x32xf32>
    %64 = arith.mulf %52, %63 : vector<1x32xf32>
    %65 = arith.addf %61, %64 : vector<1x32xf32>
    %66 = math.tanh %65 : vector<1x32xf32>
    %cst_23 = arith.constant 1.000000e+00 : f32
    %67 = vector.broadcast %cst_23 : f32 to vector<1x32xf32>
    %68 = arith.subf %67, %60 : vector<1x32xf32>
    %69 = arith.mulf %68, %66 : vector<1x32xf32>
    %70 = arith.mulf %60, %39 : vector<1x32xf32>
    %71 = arith.addf %69, %70 : vector<1x32xf32>
    %72 = arith.index_cast %c1_i32 : i32 to index
    %c0_24 = arith.constant 0 : index
    %73 = vector.load %arg10[%72, %c0_24] : memref<8x32xf32, #tpu.memory_space<vmem>>, vector<1x32xf32>
    tpu.vector_store %arg10[%72, %c0_24], %71 {strides = array<i32>} : memref<8x32xf32, #tpu.memory_space<vmem>>, vector<1x32xf32>,
    %c2_i32 = arith.constant 2 : i32
    %74 = arith.index_cast %c2_i32 : i32 to index
    %c0_25 = arith.constant 0 : index
    %75 = vector.load %arg9[%74, %c0_25] : memref<8x96xf32, #tpu.memory_space<vmem>>, vector<1x96xf32>
    %cst_26 = arith.constant dense<0.000000e+00> : vector<1x96xf32>
    %76 = tpu.matmul %71, %7, %cst_26 {dimension_numbers = #tpu.dot_dimension_numbers<[1], [0], [0], [1], [0, 0, 1, 1], [], []>} : vector<1x32xf32>, vector<32x96xf32>, vector<1x96xf32> -> vector<1x96xf32>
    %77 = vector.extract_strided_slice %75 {offsets = [0, 0], sizes = [1, 32], strides = [1, 1]} : vector<1x96xf32> to vector<1x32xf32>
    %78 = vector.extract_strided_slice %76 {offsets = [0, 0], sizes = [1, 32], strides = [1, 1]} : vector<1x96xf32> to vector<1x32xf32>
    %79 = arith.addf %77, %78 : vector<1x32xf32>
    %80 = arith.negf %79 : vector<1x32xf32>
    %81 = math.exp %80 : vector<1x32xf32>
    %cst_27 = arith.constant 1.000000e+00 : f32
    %82 = vector.broadcast %cst_27 : f32 to vector<1x32xf32>
    %83 = arith.addf %82, %81 : vector<1x32xf32>
    %84 = arith.divf %82, %83 : vector<1x32xf32>
    %85 = vector.extract_strided_slice %75 {offsets = [0, 32], sizes = [1, 32], strides = [1, 1]} : vector<1x96xf32> to vector<1x32xf32>
    %86 = vector.extract_strided_slice %76 {offsets = [0, 32], sizes = [1, 32], strides = [1, 1]} : vector<1x96xf32> to vector<1x32xf32>
    %87 = arith.addf %85, %86 : vector<1x32xf32>
    %88 = arith.negf %87 : vector<1x32xf32>
    %89 = math.exp %88 : vector<1x32xf32>
    %cst_28 = arith.constant 1.000000e+00 : f32
    %90 = vector.broadcast %cst_28 : f32 to vector<1x32xf32>
    %91 = arith.addf %90, %89 : vector<1x32xf32>
    %92 = arith.divf %90, %91 : vector<1x32xf32>
    %93 = vector.extract_strided_slice %75 {offsets = [0, 64], sizes = [1, 32], strides = [1, 1]} : vector<1x96xf32> to vector<1x32xf32>
    %94 = vector.extract_strided_slice %76 {offsets = [0, 64], sizes = [1, 32], strides = [1, 1]} : vector<1x96xf32> to vector<1x32xf32>
    %95 = arith.addf %94, %8 : vector<1x32xf32>
    %96 = arith.mulf %84, %95 : vector<1x32xf32>
    %97 = arith.addf %93, %96 : vector<1x32xf32>
    %98 = math.tanh %97 : vector<1x32xf32>
    %cst_29 = arith.constant 1.000000e+00 : f32
    %99 = vector.broadcast %cst_29 : f32 to vector<1x32xf32>
    %100 = arith.subf %99, %92 : vector<1x32xf32>
    %101 = arith.mulf %100, %98 : vector<1x32xf32>
    %102 = arith.mulf %92, %71 : vector<1x32xf32>
    %103 = arith.addf %101, %102 : vector<1x32xf32>
    %104 = arith.index_cast %c2_i32 : i32 to index
    %c0_30 = arith.constant 0 : index
    %105 = vector.load %arg10[%104, %c0_30] : memref<8x32xf32, #tpu.memory_space<vmem>>, vector<1x32xf32>
    tpu.vector_store %arg10[%104, %c0_30], %103 {strides = array<i32>} : memref<8x32xf32, #tpu.memory_space<vmem>>, vector<1x32xf32>,
    %c3_i32 = arith.constant 3 : i32
    %106 = arith.index_cast %c3_i32 : i32 to index
    %c0_31 = arith.constant 0 : index
    %107 = vector.load %arg9[%106, %c0_31] : memref<8x96xf32, #tpu.memory_space<vmem>>, vector<1x96xf32>
    %cst_32 = arith.constant dense<0.000000e+00> : vector<1x96xf32>
    %108 = tpu.matmul %103, %7, %cst_32 {dimension_numbers = #tpu.dot_dimension_numbers<[1], [0], [0], [1], [0, 0, 1, 1], [], []>} : vector<1x32xf32>, vector<32x96xf32>, vector<1x96xf32> -> vector<1x96xf32>
    %109 = vector.extract_strided_slice %107 {offsets = [0, 0], sizes = [1, 32], strides = [1, 1]} : vector<1x96xf32> to vector<1x32xf32>
    %110 = vector.extract_strided_slice %108 {offsets = [0, 0], sizes = [1, 32], strides = [1, 1]} : vector<1x96xf32> to vector<1x32xf32>
    %111 = arith.addf %109, %110 : vector<1x32xf32>
    %112 = arith.negf %111 : vector<1x32xf32>
    %113 = math.exp %112 : vector<1x32xf32>
    %cst_33 = arith.constant 1.000000e+00 : f32
    %114 = vector.broadcast %cst_33 : f32 to vector<1x32xf32>
    %115 = arith.addf %114, %113 : vector<1x32xf32>
    %116 = arith.divf %114, %115 : vector<1x32xf32>
    %117 = vector.extract_strided_slice %107 {offsets = [0, 32], sizes = [1, 32], strides = [1, 1]} : vector<1x96xf32> to vector<1x32xf32>
    %118 = vector.extract_strided_slice %108 {offsets = [0, 32], sizes = [1, 32], strides = [1, 1]} : vector<1x96xf32> to vector<1x32xf32>
    %119 = arith.addf %117, %118 : vector<1x32xf32>
    %120 = arith.negf %119 : vector<1x32xf32>
    %121 = math.exp %120 : vector<1x32xf32>
    %cst_34 = arith.constant 1.000000e+00 : f32
    %122 = vector.broadcast %cst_34 : f32 to vector<1x32xf32>
    %123 = arith.addf %122, %121 : vector<1x32xf32>
    %124 = arith.divf %122, %123 : vector<1x32xf32>
    %125 = vector.extract_strided_slice %107 {offsets = [0, 64], sizes = [1, 32], strides = [1, 1]} : vector<1x96xf32> to vector<1x32xf32>
    %126 = vector.extract_strided_slice %108 {offsets = [0, 64], sizes = [1, 32], strides = [1, 1]} : vector<1x96xf32> to vector<1x32xf32>
    %127 = arith.addf %126, %8 : vector<1x32xf32>
    %128 = arith.mulf %116, %127 : vector<1x32xf32>
    %129 = arith.addf %125, %128 : vector<1x32xf32>
    %130 = math.tanh %129 : vector<1x32xf32>
    %cst_35 = arith.constant 1.000000e+00 : f32
    %131 = vector.broadcast %cst_35 : f32 to vector<1x32xf32>
    %132 = arith.subf %131, %124 : vector<1x32xf32>
    %133 = arith.mulf %132, %130 : vector<1x32xf32>
    %134 = arith.mulf %124, %103 : vector<1x32xf32>
    %135 = arith.addf %133, %134 : vector<1x32xf32>
    %136 = arith.index_cast %c3_i32 : i32 to index
    %c0_36 = arith.constant 0 : index
    %137 = vector.load %arg10[%136, %c0_36] : memref<8x32xf32, #tpu.memory_space<vmem>>, vector<1x32xf32>
    tpu.vector_store %arg10[%136, %c0_36], %135 {strides = array<i32>} : memref<8x32xf32, #tpu.memory_space<vmem>>, vector<1x32xf32>,
    %c4_i32 = arith.constant 4 : i32
    %138 = arith.index_cast %c4_i32 : i32 to index
    %c0_37 = arith.constant 0 : index
    %139 = vector.load %arg9[%138, %c0_37] : memref<8x96xf32, #tpu.memory_space<vmem>>, vector<1x96xf32>
    %cst_38 = arith.constant dense<0.000000e+00> : vector<1x96xf32>
    %140 = tpu.matmul %135, %7, %cst_38 {dimension_numbers = #tpu.dot_dimension_numbers<[1], [0], [0], [1], [0, 0, 1, 1], [], []>} : vector<1x32xf32>, vector<32x96xf32>, vector<1x96xf32> -> vector<1x96xf32>
    %141 = vector.extract_strided_slice %139 {offsets = [0, 0], sizes = [1, 32], strides = [1, 1]} : vector<1x96xf32> to vector<1x32xf32>
    %142 = vector.extract_strided_slice %140 {offsets = [0, 0], sizes = [1, 32], strides = [1, 1]} : vector<1x96xf32> to vector<1x32xf32>
    %143 = arith.addf %141, %142 : vector<1x32xf32>
    %144 = arith.negf %143 : vector<1x32xf32>
    %145 = math.exp %144 : vector<1x32xf32>
    %cst_39 = arith.constant 1.000000e+00 : f32
    %146 = vector.broadcast %cst_39 : f32 to vector<1x32xf32>
    %147 = arith.addf %146, %145 : vector<1x32xf32>
    %148 = arith.divf %146, %147 : vector<1x32xf32>
    %149 = vector.extract_strided_slice %139 {offsets = [0, 32], sizes = [1, 32], strides = [1, 1]} : vector<1x96xf32> to vector<1x32xf32>
    %150 = vector.extract_strided_slice %140 {offsets = [0, 32], sizes = [1, 32], strides = [1, 1]} : vector<1x96xf32> to vector<1x32xf32>
    %151 = arith.addf %149, %150 : vector<1x32xf32>
    %152 = arith.negf %151 : vector<1x32xf32>
    %153 = math.exp %152 : vector<1x32xf32>
    %cst_40 = arith.constant 1.000000e+00 : f32
    %154 = vector.broadcast %cst_40 : f32 to vector<1x32xf32>
    %155 = arith.addf %154, %153 : vector<1x32xf32>
    %156 = arith.divf %154, %155 : vector<1x32xf32>
    %157 = vector.extract_strided_slice %139 {offsets = [0, 64], sizes = [1, 32], strides = [1, 1]} : vector<1x96xf32> to vector<1x32xf32>
    %158 = vector.extract_strided_slice %140 {offsets = [0, 64], sizes = [1, 32], strides = [1, 1]} : vector<1x96xf32> to vector<1x32xf32>
    %159 = arith.addf %158, %8 : vector<1x32xf32>
    %160 = arith.mulf %148, %159 : vector<1x32xf32>
    %161 = arith.addf %157, %160 : vector<1x32xf32>
    %162 = math.tanh %161 : vector<1x32xf32>
    %cst_41 = arith.constant 1.000000e+00 : f32
    %163 = vector.broadcast %cst_41 : f32 to vector<1x32xf32>
    %164 = arith.subf %163, %156 : vector<1x32xf32>
    %165 = arith.mulf %164, %162 : vector<1x32xf32>
    %166 = arith.mulf %156, %135 : vector<1x32xf32>
    %167 = arith.addf %165, %166 : vector<1x32xf32>
    %168 = arith.index_cast %c4_i32 : i32 to index
    %c0_42 = arith.constant 0 : index
    %169 = vector.load %arg10[%168, %c0_42] : memref<8x32xf32, #tpu.memory_space<vmem>>, vector<1x32xf32>
    tpu.vector_store %arg10[%168, %c0_42], %167 {strides = array<i32>} : memref<8x32xf32, #tpu.memory_space<vmem>>, vector<1x32xf32>,
    %c5_i32 = arith.constant 5 : i32
    %170 = arith.index_cast %c5_i32 : i32 to index
    %c0_43 = arith.constant 0 : index
    %171 = vector.load %arg9[%170, %c0_43] : memref<8x96xf32, #tpu.memory_space<vmem>>, vector<1x96xf32>
    %cst_44 = arith.constant dense<0.000000e+00> : vector<1x96xf32>
    %172 = tpu.matmul %167, %7, %cst_44 {dimension_numbers = #tpu.dot_dimension_numbers<[1], [0], [0], [1], [0, 0, 1, 1], [], []>} : vector<1x32xf32>, vector<32x96xf32>, vector<1x96xf32> -> vector<1x96xf32>
    %173 = vector.extract_strided_slice %171 {offsets = [0, 0], sizes = [1, 32], strides = [1, 1]} : vector<1x96xf32> to vector<1x32xf32>
    %174 = vector.extract_strided_slice %172 {offsets = [0, 0], sizes = [1, 32], strides = [1, 1]} : vector<1x96xf32> to vector<1x32xf32>
    %175 = arith.addf %173, %174 : vector<1x32xf32>
    %176 = arith.negf %175 : vector<1x32xf32>
    %177 = math.exp %176 : vector<1x32xf32>
    %cst_45 = arith.constant 1.000000e+00 : f32
    %178 = vector.broadcast %cst_45 : f32 to vector<1x32xf32>
    %179 = arith.addf %178, %177 : vector<1x32xf32>
    %180 = arith.divf %178, %179 : vector<1x32xf32>
    %181 = vector.extract_strided_slice %171 {offsets = [0, 32], sizes = [1, 32], strides = [1, 1]} : vector<1x96xf32> to vector<1x32xf32>
    %182 = vector.extract_strided_slice %172 {offsets = [0, 32], sizes = [1, 32], strides = [1, 1]} : vector<1x96xf32> to vector<1x32xf32>
    %183 = arith.addf %181, %182 : vector<1x32xf32>
    %184 = arith.negf %183 : vector<1x32xf32>
    %185 = math.exp %184 : vector<1x32xf32>
    %cst_46 = arith.constant 1.000000e+00 : f32
    %186 = vector.broadcast %cst_46 : f32 to vector<1x32xf32>
    %187 = arith.addf %186, %185 : vector<1x32xf32>
    %188 = arith.divf %186, %187 : vector<1x32xf32>
    %189 = vector.extract_strided_slice %171 {offsets = [0, 64], sizes = [1, 32], strides = [1, 1]} : vector<1x96xf32> to vector<1x32xf32>
    %190 = vector.extract_strided_slice %172 {offsets = [0, 64], sizes = [1, 32], strides = [1, 1]} : vector<1x96xf32> to vector<1x32xf32>
    %191 = arith.addf %190, %8 : vector<1x32xf32>
    %192 = arith.mulf %180, %191 : vector<1x32xf32>
    %193 = arith.addf %189, %192 : vector<1x32xf32>
    %194 = math.tanh %193 : vector<1x32xf32>
    %cst_47 = arith.constant 1.000000e+00 : f32
    %195 = vector.broadcast %cst_47 : f32 to vector<1x32xf32>
    %196 = arith.subf %195, %188 : vector<1x32xf32>
    %197 = arith.mulf %196, %194 : vector<1x32xf32>
    %198 = arith.mulf %188, %167 : vector<1x32xf32>
    %199 = arith.addf %197, %198 : vector<1x32xf32>
    %200 = arith.index_cast %c5_i32 : i32 to index
    %c0_48 = arith.constant 0 : index
    %201 = vector.load %arg10[%200, %c0_48] : memref<8x32xf32, #tpu.memory_space<vmem>>, vector<1x32xf32>
    tpu.vector_store %arg10[%200, %c0_48], %199 {strides = array<i32>} : memref<8x32xf32, #tpu.memory_space<vmem>>, vector<1x32xf32>,
    %c6_i32 = arith.constant 6 : i32
    %202 = arith.index_cast %c6_i32 : i32 to index
    %c0_49 = arith.constant 0 : index
    %203 = vector.load %arg9[%202, %c0_49] : memref<8x96xf32, #tpu.memory_space<vmem>>, vector<1x96xf32>
    %cst_50 = arith.constant dense<0.000000e+00> : vector<1x96xf32>
    %204 = tpu.matmul %199, %7, %cst_50 {dimension_numbers = #tpu.dot_dimension_numbers<[1], [0], [0], [1], [0, 0, 1, 1], [], []>} : vector<1x32xf32>, vector<32x96xf32>, vector<1x96xf32> -> vector<1x96xf32>
    %205 = vector.extract_strided_slice %203 {offsets = [0, 0], sizes = [1, 32], strides = [1, 1]} : vector<1x96xf32> to vector<1x32xf32>
    %206 = vector.extract_strided_slice %204 {offsets = [0, 0], sizes = [1, 32], strides = [1, 1]} : vector<1x96xf32> to vector<1x32xf32>
    %207 = arith.addf %205, %206 : vector<1x32xf32>
    %208 = arith.negf %207 : vector<1x32xf32>
    %209 = math.exp %208 : vector<1x32xf32>
    %cst_51 = arith.constant 1.000000e+00 : f32
    %210 = vector.broadcast %cst_51 : f32 to vector<1x32xf32>
    %211 = arith.addf %210, %209 : vector<1x32xf32>
    %212 = arith.divf %210, %211 : vector<1x32xf32>
    %213 = vector.extract_strided_slice %203 {offsets = [0, 32], sizes = [1, 32], strides = [1, 1]} : vector<1x96xf32> to vector<1x32xf32>
    %214 = vector.extract_strided_slice %204 {offsets = [0, 32], sizes = [1, 32], strides = [1, 1]} : vector<1x96xf32> to vector<1x32xf32>
    %215 = arith.addf %213, %214 : vector<1x32xf32>
    %216 = arith.negf %215 : vector<1x32xf32>
    %217 = math.exp %216 : vector<1x32xf32>
    %cst_52 = arith.constant 1.000000e+00 : f32
    %218 = vector.broadcast %cst_52 : f32 to vector<1x32xf32>
    %219 = arith.addf %218, %217 : vector<1x32xf32>
    %220 = arith.divf %218, %219 : vector<1x32xf32>
    %221 = vector.extract_strided_slice %203 {offsets = [0, 64], sizes = [1, 32], strides = [1, 1]} : vector<1x96xf32> to vector<1x32xf32>
    %222 = vector.extract_strided_slice %204 {offsets = [0, 64], sizes = [1, 32], strides = [1, 1]} : vector<1x96xf32> to vector<1x32xf32>
    %223 = arith.addf %222, %8 : vector<1x32xf32>
    %224 = arith.mulf %212, %223 : vector<1x32xf32>
    %225 = arith.addf %221, %224 : vector<1x32xf32>
    %226 = math.tanh %225 : vector<1x32xf32>
    %cst_53 = arith.constant 1.000000e+00 : f32
    %227 = vector.broadcast %cst_53 : f32 to vector<1x32xf32>
    %228 = arith.subf %227, %220 : vector<1x32xf32>
    %229 = arith.mulf %228, %226 : vector<1x32xf32>
    %230 = arith.mulf %220, %199 : vector<1x32xf32>
    %231 = arith.addf %229, %230 : vector<1x32xf32>
    %232 = arith.index_cast %c6_i32 : i32 to index
    %c0_54 = arith.constant 0 : index
    %233 = vector.load %arg10[%232, %c0_54] : memref<8x32xf32, #tpu.memory_space<vmem>>, vector<1x32xf32>
    tpu.vector_store %arg10[%232, %c0_54], %231 {strides = array<i32>} : memref<8x32xf32, #tpu.memory_space<vmem>>, vector<1x32xf32>,
    %c7_i32 = arith.constant 7 : i32
    %234 = arith.index_cast %c7_i32 : i32 to index
    %c0_55 = arith.constant 0 : index
    %235 = vector.load %arg9[%234, %c0_55] : memref<8x96xf32, #tpu.memory_space<vmem>>, vector<1x96xf32>
    %cst_56 = arith.constant dense<0.000000e+00> : vector<1x96xf32>
    %236 = tpu.matmul %231, %7, %cst_56 {dimension_numbers = #tpu.dot_dimension_numbers<[1], [0], [0], [1], [0, 0, 1, 1], [], []>} : vector<1x32xf32>, vector<32x96xf32>, vector<1x96xf32> -> vector<1x96xf32>
    %237 = vector.extract_strided_slice %235 {offsets = [0, 0], sizes = [1, 32], strides = [1, 1]} : vector<1x96xf32> to vector<1x32xf32>
    %238 = vector.extract_strided_slice %236 {offsets = [0, 0], sizes = [1, 32], strides = [1, 1]} : vector<1x96xf32> to vector<1x32xf32>
    %239 = arith.addf %237, %238 : vector<1x32xf32>
    %240 = arith.negf %239 : vector<1x32xf32>
    %241 = math.exp %240 : vector<1x32xf32>
    %cst_57 = arith.constant 1.000000e+00 : f32
    %242 = vector.broadcast %cst_57 : f32 to vector<1x32xf32>
    %243 = arith.addf %242, %241 : vector<1x32xf32>
    %244 = arith.divf %242, %243 : vector<1x32xf32>
    %245 = vector.extract_strided_slice %235 {offsets = [0, 32], sizes = [1, 32], strides = [1, 1]} : vector<1x96xf32> to vector<1x32xf32>
    %246 = vector.extract_strided_slice %236 {offsets = [0, 32], sizes = [1, 32], strides = [1, 1]} : vector<1x96xf32> to vector<1x32xf32>
    %247 = arith.addf %245, %246 : vector<1x32xf32>
    %248 = arith.negf %247 : vector<1x32xf32>
    %249 = math.exp %248 : vector<1x32xf32>
    %cst_58 = arith.constant 1.000000e+00 : f32
    %250 = vector.broadcast %cst_58 : f32 to vector<1x32xf32>
    %251 = arith.addf %250, %249 : vector<1x32xf32>
    %252 = arith.divf %250, %251 : vector<1x32xf32>
    %253 = vector.extract_strided_slice %235 {offsets = [0, 64], sizes = [1, 32], strides = [1, 1]} : vector<1x96xf32> to vector<1x32xf32>
    %254 = vector.extract_strided_slice %236 {offsets = [0, 64], sizes = [1, 32], strides = [1, 1]} : vector<1x96xf32> to vector<1x32xf32>
    %255 = arith.addf %254, %8 : vector<1x32xf32>
    %256 = arith.mulf %244, %255 : vector<1x32xf32>
    %257 = arith.addf %253, %256 : vector<1x32xf32>
    %258 = math.tanh %257 : vector<1x32xf32>
    %cst_59 = arith.constant 1.000000e+00 : f32
    %259 = vector.broadcast %cst_59 : f32 to vector<1x32xf32>
    %260 = arith.subf %259, %252 : vector<1x32xf32>
    %261 = arith.mulf %260, %258 : vector<1x32xf32>
    %262 = arith.mulf %252, %231 : vector<1x32xf32>
    %263 = arith.addf %261, %262 : vector<1x32xf32>
    %264 = arith.index_cast %c7_i32 : i32 to index
    %c0_60 = arith.constant 0 : index
    %265 = vector.load %arg10[%264, %c0_60] : memref<8x32xf32, #tpu.memory_space<vmem>>, vector<1x32xf32>
    tpu.vector_store %arg10[%264, %c0_60], %263 {strides = array<i32>} : memref<8x32xf32, #tpu.memory_space<vmem>>, vector<1x32xf32>,
    %c8_i32 = arith.constant 8 : i32
    %c0_61 = arith.constant 0 : index
    %c0_62 = arith.constant 0 : index
    %266 = vector.load %arg10[%c0_61, %c0_62] : memref<8x32xf32, #tpu.memory_space<vmem>>, vector<8x32xf32>
    %c0_63 = arith.constant 0 : index
    %c0_64 = arith.constant 0 : index
    %267 = vector.load %arg6[%c0_63, %c0_64] : memref<32x8xf32, #tpu.memory_space<vmem>>, vector<32x8xf32>
    %cst_65 = arith.constant dense<0.000000e+00> : vector<8x8xf32>
    %268 = tpu.matmul %266, %267, %cst_65 {dimension_numbers = #tpu.dot_dimension_numbers<[1], [0], [0], [1], [0, 0, 1, 1], [], []>} : vector<8x32xf32>, vector<32x8xf32>, vector<8x8xf32> -> vector<8x8xf32>
    %c0_66 = arith.constant 0 : index
    %c0_67 = arith.constant 0 : index
    %269 = vector.load %arg7[%c0_66, %c0_67] : memref<1x8xf32, #tpu.memory_space<vmem>>, vector<1x8xf32>
    %270 = vector.broadcast %269 : vector<1x8xf32> to vector<8x8xf32>
    %271 = arith.addf %268, %270 : vector<8x8xf32>
    %c0_68 = arith.constant 0 : index
    %c0_69 = arith.constant 0 : index
    %272 = vector.load %arg8[%c0_68, %c0_69] : memref<8x8xf32, #tpu.memory_space<vmem>>, vector<8x8xf32>
    tpu.vector_store %arg8[%c0_68, %c0_69], %271 {strides = array<i32>} : memref<8x8xf32, #tpu.memory_space<vmem>>, vector<8x8xf32>,
    return
  }
}

</mosaic_0001>

<bundles_post_ra>
// kernel: tpu_custom_call.1
= control target key start
LH: loop header
LB: loop body
LE: loop exit
PB: predicated region body
PF: predicated region fallthrough
CT: control target
= control target key end

     0   :  { %13 = vsyncpa [#allocation5], 0  ;;  %s1716_s0 = inlined_call_operand.hbm [shape: f32[8,16], index: 0, kind: input, shape index: {}]   ;;  %s1717_s1 = inlined_call_operand.vmem [shape: f32[1,32], index: 1, kind: input, shape index: {}]   ;;  %s1718_s2 = inlined_call_operand.vmem [shape: f32[16,96], index: 2, kind: input, shape index: {}]   ;;  %s1719_s3 = inlined_call_operand.vmem [shape: f32[32,96], index: 3, kind: input, shape index: {}]   ;;  %s1720_s4 = inlined_call_operand.vmem [shape: f32[1,96], index: 4, kind: input, shape index: {}]   ;;  %s1721_s5 = inlined_call_operand.hbm [shape: f32[1,32], index: 5, kind: input, shape index: {}]   ;;  %s1722_s6 = inlined_call_operand.vmem [shape: f32[32,8], index: 6, kind: input, shape index: {}]   ;;  %s1723_s7 = inlined_call_operand.vmem [shape: f32[1,8], index: 7, kind: input, shape index: {}]   ;;  %s1724_s8 = inlined_call_operand.hbm [shape: f32[8,8], index: 8, kind: output, shape index: {}]  }
   0x1   :  { %14 = vsyncpa [#allocation8], 0 }
   0x2   :  { %15 = vsyncpa [#allocation6], 0  ;;  %s1468_s27 = smov [#allocation4]   ;;  %s1469_s29 = smov [#allocation7]  }
   0x3   :  { %s22_s28 = sshll.u32 %s1468_s27, 4  ;;  %s40_s30 = sshll.u32 %s1469_s29, 4  ;;  %s23_s28 = int_to_ptr.vmem [resolvable:$true] %s22_s28  ;;  %s41_s30 = int_to_ptr.vmem [resolvable:$true] %s40_s30 }
   0x4   :  { %s1396_s11 = scalar_lea.hbm %s1716_s0, 128 }
   0x5   :  { %p1397_p0 = scmp.ne.s32.totalorder %s1716_s0, %s1396_s11  ;;  %p1400_p1 = scmp.lt.u32.totalorder %s1396_s11, %s1716_s0 }
   0x7   :  { %p1402_p2 = pnand %p1400_p1, %p1397_p0 }
   0x9   :  { %1405 = shalt.err (!%p1402_p2)
}
   0xa   :  { %s1406_s16 = scalar_lea.vmem %s23_s28, 128  ;;  %p1411_p4 = scmp.lt.s32.totalorder %s23_s28, %s23_s28 }
   0xb   :  { %p1407_p3 = scmp.ne.s32.totalorder %s23_s28, %s1406_s16  ;;  %p1412_p5 = scmp.lt.s32.totalorder %s1406_s16, %s1406_s16 }
   0xd   :  { %p1413_p6 = por %p1412_p5, %p1411_p4 }
   0xf   :  { %p1414_p7 = pnand %p1413_p6, %p1407_p3 }
  0x11   :  { %1417 = shalt.err (!%p1414_p7)
}
  0x12   :  { %25 = dma.hbm_to_vmem [thread:$0]  %s1716_s0, 128, %s23_s28, [#allocation5]  }
  0x13   :  { %s1418_s21 = scalar_lea.hbm %s1721_s5, 16 }
  0x14   :  { %p1419_p8 = scmp.ne.s32.totalorder %s1721_s5, %s1418_s21  ;;  %p1422_p9 = scmp.lt.u32.totalorder %s1418_s21, %s1721_s5 }
  0x16   :  { %p1424_p10 = pnand %p1422_p9, %p1419_p8 }
  0x18   :  { %1427 = shalt.err (!%p1424_p10)
}
  0x19   :  { %s1428_s26 = scalar_lea.vmem %s41_s30, 16  ;;  %s1432_s27 = scalar_lea.vmem %s41_s30, 32 }
  0x1a   :  { %p1429_p11 = scmp.ne.s32.totalorder %s41_s30, %s1428_s26  ;;  %p1433_p12 = scmp.lt.s32.totalorder %s41_s30, %s41_s30 }
  0x1b   :  { %p1434_p13 = scmp.lt.s32.totalorder %s1432_s27, %s1428_s26 }
  0x1d   :  { %p1435_p0 = por %p1434_p13, %p1433_p12 }
  0x1f   :  { %p1436_p1 = pnand %p1435_p0, %p1429_p11 }
  0x21   :  { %1439 = shalt.err (!%p1436_p1)
}
  0x22   :  { %43 = dma.hbm_to_vmem [thread:$0]  %s1721_s5, 16, %s41_s30, [#allocation8]  }
  0x23   :  { %1462 = dma.done.wait [#allocation5], 128  }
  0x24   :  { %1463 = vsyncadd [#allocation5], 4294967168 }
  0x25   :  { %1464 = dma.done.wait [#allocation8], 16  }
  0x26   :  { %1465 = vsyncadd [#allocation8], 4294967280  ;;  %v1470_v0 = vmov 0.0|0.0   ;;  %vm1471_vm0 = vmmov 0   ;;  %v1472_v1 = vmov 0.0   ;;  %v55_v2 = vld [vmem:[%s1718_s2] sm:$0xff]  ;;  %v254_v14 = vlaneseq }
  0x27   :  { %1282 = vmatprep.subr.bf16.mxu0 %v1470_v0  ;;  %1285 = vmatprep.subr.bf16.mxu1 %v1470_v0  ;;  %v56_v3 = vld [vmem:[%s1718_s2 + $0x8] sm:$0xff]  ;;  %v140_v4 = vld [vmem:[%s1719_s3] sm:$0xff]  ;;  %v142_v7 = vld [vmem:[%s1719_s3 + $0x10] sm:$0xff]  ;;  %vm64_vm1 = vcmask 130048   ;;  %s1473_s2 = smov 64   ;;  %vm147_vm2 = vcmask 261120  }
  0x28   :  { %1180 = vmatprep.mubr.msk.f32.mxu0 %vm1471_vm0, %v1472_v1  ;;  %1191 = vmatprep.mubr.msk.f32.mxu1 %vm1471_vm0, %v1472_v1  ;;  %v1283_v5 = vpack.c.bf16 %v56_v3, %v55_v2  ;;  %v141_v6 = vld [vmem:[%s1719_s3 + $0x8] sm:$0xff]  ;;  %v143_v9 = vld [vmem:[%s1719_s3 + $0x18] sm:$0xff]  ;;  %v54_v11 = vld [vmem:[#allocation4] sm:$0xff]  ;;  %vm138_vm3 = vcmask 785408   ;;  %v255_v17 = vshrl.u32 %v254_v14, 7  ;;  %s1474_s20 = smov 32  }
  0x29   :  { %v1567_v8 = vpack.c.bf16 %v141_v6, %v140_v4  ;;  %v1111_v10 = vld [vmem:[#allocation7] ss:$0 sm:$0xff]  ;;  %v1574_v12 = vpack.c.bf16 %v143_v9, %v142_v7  ;;  %v145_v13 = vld [vmem:[%s1717_s1] sm:$0x1]  ;;  %vm267_vm4 = vcmask 253952   ;;  %s1476_s29 = smov [#allocation9]  }
  0x2a   :  { %1284 = vmatpush3.bf16.msra.mxu0 %v1283_v5  ;;  %233 = vrot.lane.b32.xlu0 %v1111_v10, %s1473_s2  ;;  %v1107_v15 = vld [vmem:[%s1720_s4] ss:$0 sm:$0xff]  ;;  %v256_v21 = vsub.s32 0, %v255_v17  ;;  %s1475_s4 = smov 96   ;;  %s1097_s9 = sshll.u32 %s1476_s29, 4  ;;  %vm1089_vm5 = vcmask 64512   ;;  %s1098_s9 = int_to_ptr.vmem [resolvable:$true] %s1097_s9 }
  0x2b   :  { %1287 = vmatpush3.bf16.msra.mxu1 %v1567_v8  ;;  %1291 = vmatprep.subr.bf16.mxu0 %v1470_v0  ;;  %s1440_s5 = scalar_lea.vmem %s1098_s9, 128  ;;  %p1445_p3 = scmp.lt.s32.totalorder %s1098_s9, %s1098_s9 }
  0x2c   :  { %1288 = vmatprep.subr.bf16.mxu1 %v1470_v0  ;;  %v257_v25 = vrot.slane %v145_v13, %v256_v21  ;;  %p1441_p2 = scmp.ne.s32.totalorder %s1098_s9, %s1440_s5  ;;  %p1446_p4 = scmp.lt.s32.totalorder %s1440_s5, %s1440_s5 }
  0x2d   :  { %1181 = vmatmul.mubr.msk.f32.vlgmr.msra.gmra.mrb[0].mxu0 %vm64_vm1, %v54_v11 }
  0x2e   :  { %1293 = vmatpush3.bf16.msra.mxu0 %v1567_v8  ;;  %1202 = vmatprep.mubr.msk.f32.mxu0 %vm1471_vm0, %v1472_v1  ;;  %p1447_p5 = por %p1446_p4, %p1445_p3 }
  0x2f   :  { %1290 = vmatpush3.bf16.msra.mxu1 %v1574_v12  ;;  %1294 = vmatprep.subr.bf16.mxu0 %v1470_v0 }
  0x30   :  { %1297 = vmatprep.subr.bf16.mxu1 %v1470_v0  ;;  %p1448_p6 = pnand %p1447_p5, %p1441_p2 }
  0x32   :  { %1192 = vmatmul.mubr.msk.f32.vlgmr.msra.gmra.mrb[0].mxu1 %vm147_vm2, %v145_v13  ;;  %1296 = vmatpush3.bf16.msra.mxu0 %v1574_v12 }
  0x33   :  { %1299 = vmatpush3.bf16.msra.mxu1 %v1567_v8  ;;  %1213 = vmatprep.mubr.msk.f32.mxu1 %vm1471_vm0, %v1472_v1 }
  0x34   :  { %1300 = vmatprep.subr.bf16.mxu1 %v1470_v0  ;;  %1303 = vmatprep.subr.bf16.mxu0 %v1470_v0 }
  0x37   :  { %1302 = vmatpush3.bf16.msra.mxu1 %v1574_v12 }
  0x38   :  { %1309 = vmatprep.subr.bf16.mxu1 %v1470_v0 }
  0x9c   :  { %v1599_v20 = vpop.permute.xlu0 %233 }
 0x100   :  { %v134_v16 = vpop.f32.mrb[0].mxu0 }
 0x101   :  { %v135_v18 = vadd.f32 %v1107_v15, %v134_v16  ;;  %v1182_v19 = vpop.f32.mrb[1].mxu0 }
 0x103   :  { %139 = vst.msk [vmem:[#allocation2] sm:$0xff] %vm138_vm3, %v135_v18 }
 0x105   :  { %v217_v22 = vpop.f32.mrb[0].mxu1 }
 0x106   :  { %v236_v23 = vadd.f32 %v1599_v20, %v217_v22  ;;  %v1193_v24 = vpop.f32.mrb[1].mxu1 }
 0x108   :  { %238 = vrot.lane.b32.xlu0 %v236_v23, %s1473_s2 }
 0x10a   :  { %v146_v26 = vld [vmem:[#allocation2] sm:$0x1]  ;;  %v269_v47 = vld [vmem:[#allocation2 + $0x1] sm:$0x1]  ;;  %v374_v5 = vld [vmem:[#allocation2 + $0x2] sm:$0x1] }
 0x10b   :  { %v221_v27 = vadd.f32 %v217_v22, %v146_v26 }
 0x10c   :  { %258 = vrot.lane.b32.xlu0 %v257_v25, %s1474_s20 }
 0x10d   :  { %v1110_v28 = vmul.f32 -1.442695, %v221_v27 }
 0x10f   :  { %1348 = vpow2.f32 %v1110_v28  ;;  %v479_v28 = vld [vmem:[#allocation2 + $0x3] sm:$0x1] }
 0x119   :  { %v1349_v29 = vpop.eup %1348 }
 0x11a   :  { %v225_v30 = vadd.f32 1.0, %v1349_v29 }
 0x11c   :  { %1350 = vrcp.f32 %v225_v30 }
 0x126   :  { %v1351_v31 = vpop.eup %1350 }
 0x127   :  { %v248_v38 = vsub.f32 1.0, %v1351_v31 }
 0x17a   :  { %v239_v32 = vpop.permute.xlu0 %238 }
 0x17b   :  { %v241_v33 = vmul.f32 %v1351_v31, %v239_v32 }
 0x17d   :  { %243 = vrot.lane.b32.xlu1 %v241_v33, %s1473_s2 }
 0x17e   :  { %v259_v37 = vpop.permute.xlu0 %258 }
 0x17f   :  { %v261_v40 = vmul.f32 %v1351_v31, %v259_v37 }
 0x1ef   :  { %v244_v34 = vpop.permute.xlu1 %243 }
 0x1f0   :  { %v246_v35 = vadd.f32 %v244_v34, %v146_v26 }
 0x1f2   :  { %1352 = vtanh.f32 %v246_v35 }
 0x1fc   :  { %v1353_v36 = vpop.eup %1352 }
 0x1fd   :  { %250 = vrot.lane.b32.xlu1 %v1353_v36, %s1475_s4 }
 0x26f   :  { %v251_v39 = vpop.permute.xlu1 %250 }
 0x270   :  { %v253_v41 = vmul.f32 %v251_v39, %v248_v38 }
 0x272   :  { %v262_v42 = vadd.f32 %v261_v40, %v253_v41 }
 0x274   :  { %264 = vrot.lane.b32.xlu1 %v262_v42, %s1475_s4 }
 0x2e6   :  { %v265_v43 = vpop.permute.xlu1 %264 }
 0x2e7   :  { %268 = vst.msk [vmem:[#allocation3] sm:$0x1] %vm267_vm4, %v265_v43  ;;  %1203 = vmatmul.mubr.msk.f32.vlgmr.msra.gmra.mrb[2].mxu0 %vm147_vm2, %v265_v43 }
 0x2e8   :  { %1305 = vmatpush3.bf16.msra.mxu0 %v1567_v8  ;;  %1224 = vmatprep.mubr.msk.f32.mxu0 %vm1471_vm0, %v1472_v1 }
 0x2e9   :  { %1306 = vmatprep.subr.bf16.mxu0 %v1470_v0 }
 0x2ec   :  { %1308 = vmatpush3.bf16.msra.mxu0 %v1574_v12 }
 0x2ed   :  { %1315 = vmatprep.subr.bf16.mxu0 %v1470_v0 }
 0x3ba   :  { %v338_v44 = vpop.f32.mrb[2].mxu0 }
 0x3bb   :  { %v349_v45 = vadd.f32 %v338_v44, %v1599_v20  ;;  %v1204_v46 = vpop.f32.mrb[3].mxu0  ;;  %v342_v48 = vadd.f32 %v338_v44, %v269_v47 }
 0x3bd   :  { %351 = vrot.lane.b32.xlu0 %v349_v45, %s1473_s2  ;;  %v1113_v49 = vmul.f32 -1.442695, %v342_v48  ;;  %v584_v48 = vld [vmem:[#allocation2 + $0x4] sm:$0x1] }
 0x3bf   :  { %1354 = vpow2.f32 %v1113_v49 }
 0x3c9   :  { %v1355_v50 = vpop.eup %1354 }
 0x3ca   :  { %v346_v51 = vadd.f32 1.0, %v1355_v50 }
 0x3cc   :  { %1356 = vrcp.f32 %v346_v51 }
 0x3d6   :  { %v1357_v52 = vpop.eup %1356 }
 0x3d7   :  { %v361_v58 = vsub.f32 1.0, %v1357_v52  ;;  %v367_v60 = vmul.f32 %v1357_v52, %v262_v42 }
 0x42f   :  { %v352_v53 = vpop.permute.xlu0 %351 }
 0x430   :  { %v354_v54 = vmul.f32 %v1357_v52, %v352_v53 }
 0x432   :  { %356 = vrot.lane.b32.xlu1 %v354_v54, %s1473_s2 }
 0x4a4   :  { %v357_v55 = vpop.permute.xlu1 %356 }
 0x4a5   :  { %v359_v56 = vadd.f32 %v357_v55, %v269_v47 }
 0x4a7   :  { %1358 = vtanh.f32 %v359_v56 }
 0x4b1   :  { %v1359_v57 = vpop.eup %1358 }
 0x4b2   :  { %363 = vrot.lane.b32.xlu0 %v1359_v57, %s1475_s4 }
 0x524   :  { %v364_v59 = vpop.permute.xlu0 %363 }
 0x525   :  { %v366_v61 = vmul.f32 %v364_v59, %v361_v58 }
 0x527   :  { %v368_v62 = vadd.f32 %v367_v60, %v366_v61 }
 0x529   :  { %370 = vrot.lane.b32.xlu1 %v368_v62, %s1475_s4 }
 0x59b   :  { %v371_v63 = vpop.permute.xlu1 %370 }
 0x59c   :  { %373 = vst.msk [vmem:[#allocation3 + $0x1] sm:$0x1] %vm267_vm4, %v371_v63  ;;  %1214 = vmatmul.mubr.msk.f32.vlgmr.msra.gmra.mrb[2].mxu1 %vm147_vm2, %v371_v63 }
 0x59d   :  { %1311 = vmatpush3.bf16.msra.mxu1 %v1567_v8  ;;  %1235 = vmatprep.mubr.msk.f32.mxu1 %vm1471_vm0, %v1472_v1 }
 0x59e   :  { %1312 = vmatprep.subr.bf16.mxu1 %v1470_v0 }
 0x5a1   :  { %1314 = vmatpush3.bf16.msra.mxu1 %v1574_v12 }
 0x5a2   :  { %1321 = vmatprep.subr.bf16.mxu1 %v1470_v0 }
 0x66f   :  { %v443_v2 = vpop.f32.mrb[2].mxu1 }
 0x670   :  { %v454_v3 = vadd.f32 %v443_v2, %v1599_v20  ;;  %v1215_v4 = vpop.f32.mrb[3].mxu1  ;;  %v447_v6 = vadd.f32 %v443_v2, %v374_v5 }
 0x672   :  { %456 = vrot.lane.b32.xlu0 %v454_v3, %s1473_s2  ;;  %v1115_v7 = vmul.f32 -1.442695, %v447_v6  ;;  %v689_v6 = vld [vmem:[#allocation2 + $0x5] sm:$0x1] }
 0x674   :  { %1360 = vpow2.f32 %v1115_v7 }
 0x67e   :  { %v1361_v9 = vpop.eup %1360 }
 0x67f   :  { %v451_v10 = vadd.f32 1.0, %v1361_v9 }
 0x681   :  { %1362 = vrcp.f32 %v451_v10 }
 0x68b   :  { %v1363_v11 = vpop.eup %1362 }
 0x68c   :  { %v466_v18 = vsub.f32 1.0, %v1363_v11  ;;  %v472_v21 = vmul.f32 %v1363_v11, %v368_v62 }
 0x6e4   :  { %v457_v13 = vpop.permute.xlu0 %456 }
 0x6e5   :  { %v459_v14 = vmul.f32 %v1363_v11, %v457_v13 }
 0x6e7   :  { %461 = vrot.lane.b32.xlu1 %v459_v14, %s1473_s2 }
 0x759   :  { %v462_v15 = vpop.permute.xlu1 %461 }
 0x75a   :  { %v464_v16 = vadd.f32 %v462_v15, %v374_v5 }
 0x75c   :  { %1364 = vtanh.f32 %v464_v16 }
 0x766   :  { %v1365_v17 = vpop.eup %1364 }
 0x767   :  { %468 = vrot.lane.b32.xlu0 %v1365_v17, %s1475_s4 }
 0x7d9   :  { %v469_v19 = vpop.permute.xlu0 %468 }
 0x7da   :  { %v471_v22 = vmul.f32 %v469_v19, %v466_v18 }
 0x7dc   :  { %v473_v23 = vadd.f32 %v472_v21, %v471_v22 }
 0x7de   :  { %475 = vrot.lane.b32.xlu1 %v473_v23, %s1475_s4 }
 0x850   :  { %v476_v24 = vpop.permute.xlu1 %475 }
 0x851   :  { %478 = vst.msk [vmem:[#allocation3 + $0x2] sm:$0x1] %vm267_vm4, %v476_v24  ;;  %1225 = vmatmul.mubr.msk.f32.vlgmr.msra.gmra.mrb[4].mxu0 %vm147_vm2, %v476_v24 }
 0x852   :  { %1317 = vmatpush3.bf16.msra.mxu0 %v1567_v8  ;;  %1246 = vmatprep.mubr.msk.f32.mxu0 %vm1471_vm0, %v1472_v1 }
 0x853   :  { %1318 = vmatprep.subr.bf16.mxu0 %v1470_v0 }
 0x856   :  { %1320 = vmatpush3.bf16.msra.mxu0 %v1574_v12 }
 0x857   :  { %1327 = vmatprep.subr.bf16.mxu0 %v1470_v0 }
 0x924   :  { %v548_v25 = vpop.f32.mrb[4].mxu0 }
 0x925   :  { %v559_v26 = vadd.f32 %v548_v25, %v1599_v20  ;;  %v1226_v27 = vpop.f32.mrb[5].mxu0  ;;  %v552_v29 = vadd.f32 %v548_v25, %v479_v28 }
 0x926   :  { %v794_v27 = vld [vmem:[#allocation2 + $0x6] sm:$0x1] }
 0x927   :  { %561 = vrot.lane.b32.xlu0 %v559_v26, %s1473_s2  ;;  %v1117_v30 = vmul.f32 -1.442695, %v552_v29 }
 0x929   :  { %1366 = vpow2.f32 %v1117_v30 }
 0x933   :  { %v1367_v31 = vpop.eup %1366 }
 0x934   :  { %v556_v32 = vadd.f32 1.0, %v1367_v31 }
 0x936   :  { %1368 = vrcp.f32 %v556_v32 }
 0x940   :  { %v1369_v33 = vpop.eup %1368 }
 0x941   :  { %v571_v39 = vsub.f32 1.0, %v1369_v33  ;;  %v577_v41 = vmul.f32 %v1369_v33, %v473_v23 }
 0x999   :  { %v562_v34 = vpop.permute.xlu0 %561 }
 0x99a   :  { %v564_v35 = vmul.f32 %v1369_v33, %v562_v34 }
 0x99c   :  { %566 = vrot.lane.b32.xlu1 %v564_v35, %s1473_s2 }
 0xa0e   :  { %v567_v36 = vpop.permute.xlu1 %566 }
 0xa0f   :  { %v569_v37 = vadd.f32 %v567_v36, %v479_v28 }
 0xa11   :  { %1370 = vtanh.f32 %v569_v37 }
 0xa1b   :  { %v1371_v38 = vpop.eup %1370 }
 0xa1c   :  { %573 = vrot.lane.b32.xlu0 %v1371_v38, %s1475_s4 }
 0xa8e   :  { %v574_v40 = vpop.permute.xlu0 %573 }
 0xa8f   :  { %v576_v42 = vmul.f32 %v574_v40, %v571_v39 }
 0xa91   :  { %v578_v43 = vadd.f32 %v577_v41, %v576_v42 }
 0xa93   :  { %580 = vrot.lane.b32.xlu1 %v578_v43, %s1475_s4 }
 0xb05   :  { %v581_v44 = vpop.permute.xlu1 %580 }
 0xb06   :  { %583 = vst.msk [vmem:[#allocation3 + $0x3] sm:$0x1] %vm267_vm4, %v581_v44  ;;  %1236 = vmatmul.mubr.msk.f32.vlgmr.msra.gmra.mrb[4].mxu1 %vm147_vm2, %v581_v44 }
 0xb07   :  { %1323 = vmatpush3.bf16.msra.mxu1 %v1567_v8  ;;  %1257 = vmatprep.mubr.msk.f32.mxu1 %vm1471_vm0, %v1472_v1 }
 0xb08   :  { %1324 = vmatprep.subr.bf16.mxu1 %v1470_v0 }
 0xb0b   :  { %1326 = vmatpush3.bf16.msra.mxu1 %v1574_v12 }
 0xb0c   :  { %1333 = vmatprep.subr.bf16.mxu1 %v1470_v0 }
 0xbd9   :  { %v653_v45 = vpop.f32.mrb[4].mxu1 }
 0xbda   :  { %v664_v46 = vadd.f32 %v653_v45, %v1599_v20  ;;  %v1237_v47 = vpop.f32.mrb[5].mxu1  ;;  %v657_v49 = vadd.f32 %v653_v45, %v584_v48 }
 0xbdc   :  { %666 = vrot.lane.b32.xlu0 %v664_v46, %s1473_s2  ;;  %v1119_v50 = vmul.f32 -1.442695, %v657_v49  ;;  %v899_v46 = vld [vmem:[#allocation2 + $0x7] sm:$0x1] }
 0xbde   :  { %1372 = vpow2.f32 %v1119_v50 }
 0xbe8   :  { %v1373_v51 = vpop.eup %1372 }
 0xbe9   :  { %v661_v52 = vadd.f32 1.0, %v1373_v51 }
 0xbeb   :  { %1374 = vrcp.f32 %v661_v52 }
 0xbf5   :  { %v1375_v53 = vpop.eup %1374 }
 0xbf6   :  { %v676_v59 = vsub.f32 1.0, %v1375_v53  ;;  %v682_v61 = vmul.f32 %v1375_v53, %v578_v43 }
 0xc4e   :  { %v667_v54 = vpop.permute.xlu0 %666 }
 0xc4f   :  { %v669_v55 = vmul.f32 %v1375_v53, %v667_v54 }
 0xc51   :  { %671 = vrot.lane.b32.xlu1 %v669_v55, %s1473_s2 }
 0xcc3   :  { %v672_v56 = vpop.permute.xlu1 %671 }
 0xcc4   :  { %v674_v57 = vadd.f32 %v672_v56, %v584_v48 }
 0xcc6   :  { %1376 = vtanh.f32 %v674_v57  ;;  %v1006_v57 = vld [vmem:[%s1722_s6 + $0x8] sm:$0xff] }
 0xcd0   :  { %v1377_v58 = vpop.eup %1376 }
 0xcd1   :  { %678 = vrot.lane.b32.xlu0 %v1377_v58, %s1475_s4 }
 0xd43   :  { %v679_v60 = vpop.permute.xlu0 %678 }
 0xd44   :  { %v681_v62 = vmul.f32 %v679_v60, %v676_v59  ;;  %v1007_v59 = vld [vmem:[%s1722_s6 + $0x10] sm:$0xff]  ;;  %v1008_v60 = vld [vmem:[%s1722_s6 + $0x18] sm:$0xff] }
 0xd46   :  { %v683_v63 = vadd.f32 %v682_v61, %v681_v62  ;;  %v1337_v61 = vpack.c.bf16 %v1008_v60, %v1007_v59 }
 0xd48   :  { %685 = vrot.lane.b32.xlu1 %v683_v63, %s1475_s4 }
 0xdba   :  { %v686_v2 = vpop.permute.xlu1 %685 }
 0xdbb   :  { %688 = vst.msk [vmem:[#allocation3 + $0x4] sm:$0x1] %vm267_vm4, %v686_v2  ;;  %1247 = vmatmul.mubr.msk.f32.vlgmr.msra.gmra.mrb[6].mxu0 %vm147_vm2, %v686_v2 }
 0xdbc   :  { %1329 = vmatpush3.bf16.msra.mxu0 %v1567_v8  ;;  %1268 = vmatprep.mubr.msk.f32.mxu0 %vm1471_vm0, %v1472_v1 }
 0xdbd   :  { %1330 = vmatprep.subr.bf16.mxu0 %v1470_v0 }
 0xdc0   :  { %1332 = vmatpush3.bf16.msra.mxu0 %v1574_v12 }
 0xe8e   :  { %v758_v3 = vpop.f32.mrb[6].mxu0 }
 0xe8f   :  { %v769_v4 = vadd.f32 %v758_v3, %v1599_v20  ;;  %v1248_v5 = vpop.f32.mrb[7].mxu0  ;;  %v762_v7 = vadd.f32 %v758_v3, %v689_v6 }
 0xe91   :  { %771 = vrot.lane.b32.xlu0 %v769_v4, %s1473_s2  ;;  %v1121_v9 = vmul.f32 -1.442695, %v762_v7  ;;  %v1126_v7 = vld [vmem:[%s1723_s7] ss:$0 sm:$0xff] }
 0xe93   :  { %1378 = vpow2.f32 %v1121_v9 }
 0xe9d   :  { %v1379_v10 = vpop.eup %1378 }
 0xe9e   :  { %v766_v11 = vadd.f32 1.0, %v1379_v10 }
 0xea0   :  { %1380 = vrcp.f32 %v766_v11 }
 0xeaa   :  { %v1381_v8 = vpop.eup %1380 }
 0xeab   :  { %v781_v17 = vsub.f32 1.0, %v1381_v8  ;;  %v787_v19 = vmul.f32 %v1381_v8, %v683_v63 }
 0xf03   :  { %v772_v13 = vpop.permute.xlu0 %771 }
 0xf04   :  { %v774_v14 = vmul.f32 %v1381_v8, %v772_v13 }
 0xf06   :  { %776 = vrot.lane.b32.xlu1 %v774_v14, %s1473_s2 }
 0xf78   :  { %v777_v15 = vpop.permute.xlu1 %776 }
 0xf79   :  { %v779_v12 = vadd.f32 %v777_v15, %v689_v6 }
 0xf7b   :  { %1382 = vtanh.f32 %v779_v12 }
 0xf85   :  { %v1383_v16 = vpop.eup %1382 }
 0xf86   :  { %783 = vrot.lane.b32.xlu0 %v1383_v16, %s1475_s4 }
 0xff8   :  { %v784_v18 = vpop.permute.xlu0 %783 }
 0xff9   :  { %v786_v21 = vmul.f32 %v784_v18, %v781_v17 }
 0xffb   :  { %v788_v22 = vadd.f32 %v787_v19, %v786_v21 }
 0xffd   :  { %790 = vrot.lane.b32.xlu1 %v788_v22, %s1475_s4 }
0x106f   :  { %v791_v23 = vpop.permute.xlu1 %790 }
0x1070   :  { %793 = vst.msk [vmem:[#allocation3 + $0x5] sm:$0x1] %vm267_vm4, %v791_v23  ;;  %1258 = vmatmul.mubr.msk.f32.vlgmr.msra.gmra.mrb[6].mxu1 %vm147_vm2, %v791_v23 }
0x1071   :  { %1279 = vmatprep.mubr.msk.f32.mxu1 %vm1471_vm0, %v1472_v1 }
0x1143   :  { %v863_v24 = vpop.f32.mrb[6].mxu1 }
0x1144   :  { %v874_v25 = vadd.f32 %v863_v24, %v1599_v20  ;;  %v1259_v26 = vpop.f32.mrb[7].mxu1  ;;  %v867_v28 = vadd.f32 %v863_v24, %v794_v27 }
0x1146   :  { %876 = vrot.lane.b32.xlu0 %v874_v25, %s1473_s2  ;;  %v1123_v29 = vmul.f32 -1.442695, %v867_v28 }
0x1148   :  { %1384 = vpow2.f32 %v1123_v29 }
0x1152   :  { %v1385_v30 = vpop.eup %1384 }
0x1153   :  { %v871_v31 = vadd.f32 1.0, %v1385_v30 }
0x1155   :  { %1386 = vrcp.f32 %v871_v31 }
0x115f   :  { %v1387_v32 = vpop.eup %1386 }
0x1160   :  { %v886_v37 = vsub.f32 1.0, %v1387_v32  ;;  %v892_v39 = vmul.f32 %v1387_v32, %v788_v22 }
0x11b8   :  { %v877_v33 = vpop.permute.xlu0 %876 }
0x11b9   :  { %v879_v34 = vmul.f32 %v1387_v32, %v877_v33 }
0x11bb   :  { %881 = vrot.lane.b32.xlu1 %v879_v34, %s1473_s2 }
0x122d   :  { %v882_v35 = vpop.permute.xlu1 %881 }
0x122e   :  { %v884_v1 = vadd.f32 %v882_v35, %v794_v27 }
0x1230   :  { %1388 = vtanh.f32 %v884_v1 }
0x123a   :  { %v1389_v36 = vpop.eup %1388 }
0x123b   :  { %888 = vrot.lane.b32.xlu0 %v1389_v36, %s1475_s4 }
0x12ad   :  { %v889_v38 = vpop.permute.xlu0 %888 }
0x12ae   :  { %v891_v40 = vmul.f32 %v889_v38, %v886_v37 }
0x12b0   :  { %v893_v41 = vadd.f32 %v892_v39, %v891_v40 }
0x12b2   :  { %895 = vrot.lane.b32.xlu1 %v893_v41, %s1475_s4 }
0x1324   :  { %v896_v42 = vpop.permute.xlu1 %895 }
0x1325   :  { %898 = vst.msk [vmem:[#allocation3 + $0x6] sm:$0x1] %vm267_vm4, %v896_v42  ;;  %1269 = vmatmul.mubr.msk.f32.vlgmr.msra.gmra.mrb[8].mxu0 %vm147_vm2, %v896_v42 }
0x13f8   :  { %v968_v43 = vpop.f32.mrb[8].mxu0 }
0x13f9   :  { %v979_v44 = vadd.f32 %v968_v43, %v1599_v20  ;;  %v1270_v45 = vpop.f32.mrb[9].mxu0  ;;  %v972_v47 = vadd.f32 %v968_v43, %v899_v46  ;;  %v1005_v20 = vld [vmem:[%s1722_s6] sm:$0xff] }
0x13fa   :  { %v1334_v58 = vpack.c.bf16 %v1006_v57, %v1005_v20 }
0x13fb   :  { %981 = vrot.lane.b32.xlu0 %v979_v44, %s1473_s2  ;;  %v1125_v48 = vmul.f32 -1.442695, %v972_v47 }
0x13fc   :  { %1335 = vmatpush3.bf16.msra.mxu1 %v1334_v58 }
0x13fd   :  { %1390 = vpow2.f32 %v1125_v48  ;;  %1336 = vmatprep.subr.bf16.mxu1 %v1470_v0 }
0x1400   :  { %1338 = vmatpush3.bf16.msra.mxu1 %v1337_v61 }
0x1407   :  { %v1391_v49 = vpop.eup %1390 }
0x1408   :  { %v976_v50 = vadd.f32 1.0, %v1391_v49 }
0x140a   :  { %1392 = vrcp.f32 %v976_v50 }
0x1414   :  { %v1393_v51 = vpop.eup %1392 }
0x1415   :  { %v991_v62 = vsub.f32 1.0, %v1393_v51  ;;  %v997_v2 = vmul.f32 %v1393_v51, %v893_v41 }
0x146d   :  { %v982_v52 = vpop.permute.xlu0 %981 }
0x146e   :  { %v984_v53 = vmul.f32 %v1393_v51, %v982_v52 }
0x1470   :  { %986 = vrot.lane.b32.xlu1 %v984_v53, %s1473_s2 }
0x14e2   :  { %v987_v54 = vpop.permute.xlu1 %986 }
0x14e3   :  { %v989_v55 = vadd.f32 %v987_v54, %v899_v46 }
0x14e5   :  { %1394 = vtanh.f32 %v989_v55 }
0x14ef   :  { %v1395_v56 = vpop.eup %1394 }
0x14f0   :  { %993 = vrot.lane.b32.xlu0 %v1395_v56, %s1475_s4 }
0x1562   :  { %v994_v63 = vpop.permute.xlu0 %993 }
0x1563   :  { %v996_v3 = vmul.f32 %v994_v63, %v991_v62 }
0x1565   :  { %v998_v4 = vadd.f32 %v997_v2, %v996_v3 }
0x1567   :  { %1000 = vrot.lane.b32.xlu1 %v998_v4, %s1475_s4 }
0x15d9   :  { %v1001_v5 = vpop.permute.xlu1 %1000 }
0x15da   :  { %1003 = vst.msk [vmem:[#allocation3 + $0x7] sm:$0x1] %vm267_vm4, %v1001_v5 }
0x15e1   :  { %v1004_v6 = vld [vmem:[#allocation3] sm:$0xff] }
0x15e2   :  { %1280 = vmatmul.mubr.msk.f32.vlgmr.msra.gmra.mrb[8].mxu1 %vm147_vm2, %v1004_v6 }
0x16b5   :  { %v1085_v0 = vpop.f32.mrb[8].mxu1 }
0x16b6   :  { %v1086_v9 = vadd.f32 %v1126_v7, %v1085_v0  ;;  %v1281_v10 = vpop.f32.mrb[9].mxu1 }
0x16b8   :  { %1090 = vst.msk [vmem:[#allocation9] sm:$0xff] %vm1089_vm5, %v1086_v9 }
0x16b9   :  { %1451 = shalt.err (!%p1448_p6)
}
0x16ba   :  { %s1452_s11 = scalar_lea.hbm %s1724_s8, 128 }
0x16bb   :  { %p1453_p7 = scmp.ne.s32.totalorder %s1724_s8, %s1452_s11  ;;  %p1456_p8 = scmp.lt.u32.totalorder %s1452_s11, %s1724_s8 }
0x16bd   :  { %p1458_p9 = pnand %p1456_p8, %p1453_p7 }
0x16bf   :  { %1461 = shalt.err (!%p1458_p9)
}
0x16c0   :  { %1100 = dma.vmem_to_hbm [thread:$0]  %s1098_s9, 128, %s1724_s8, [#allocation6]  }
0x16c1   :  { %1466 = dma.done.wait [#allocation6], 128  }
0x16c2   :  { %1467 = vsyncadd [#allocation6], 4294967168 }
0x16c3   :  { %1104 = vsyncpa [#allocation5], 1 }
0x16c4   :  { %1105 = vsyncpa [#allocation8], 1 }
0x16c5   :  { %1106 = vsyncpa [#allocation6], 1 }

</bundles_post_ra>
